<compile_context>
chip_gen: v7x
topology: tpu7x:2x2x1
jax: 0.10.0
libtpu: 0.0.40
codegen_flags: <defaults>
</compile_context>

<pallas_src>
import math

import jax
import jax.numpy as jnp
from jax import lax
from jax.experimental import pallas as pl
from jax.experimental.pallas import tpu as pltpu


def _bert_intermediate_kernel(x_ref, w_ref, b_ref, o_ref):
    # x_ref: (TM, H)   w_ref: (H, TN)   b_ref: (1, TN)   o_ref: (TM, TN)
    y = jnp.dot(x_ref[...], w_ref[...], preferred_element_type=jnp.float32)
    y = y + b_ref[...].astype(jnp.float32)

    # exact GELU:  y * 0.5 * (1 + erf(y / sqrt(2)))  -- matches the PyTorch `gelu`.
    # TODO(synk): if a bundle dump shows the VALU/EUP erf chain saturating once
    # the kernel is compute-bound (v6e/v7x), consider tanh-GELU (numerics change).
    inv_sqrt2 = jnp.float32(1.0 / math.sqrt(2.0))
    act = y * 0.5 * (1.0 + lax.erf(y * inv_sqrt2))

    o_ref[...] = act.astype(o_ref.dtype)


def _round_up(x, m):
    return ((x + m - 1) // m) * m


def _vmem_budget_bytes():
    """Generation-aware scoped-VMEM budget with headroom for Mosaic scratch."""
    cap = 64 << 20  # conservative fallback (v7x per-TC VMEM)
    try:
        info = pltpu.get_tpu_info()
        for attr in ("vmem_capacity_bytes", "vmem_bytes", "vmem_size_bytes"):
            v = getattr(info, attr, None)
            if v:
                cap = int(v)
                break
    except Exception:
        pass
    # leave ~16 MiB headroom; never ask for more than ~110 MiB even on 128 MiB parts
    return min(cap - (16 << 20), 110 << 20)


def bert_intermediate(hidden_states, weight, bias, *, tm=1024, tn=1024):
    """hidden_states: (B, S, H); weight: (H, N); bias: (N,) -> (B, S, N)."""
    B, S, H = hidden_states.shape
    Hw, N = weight.shape
    assert Hw == H, "weight must be [hidden, intermediate]"
    M = B * S
    dtype = hidden_states.dtype
    itemsize = jnp.dtype(dtype).itemsize
    # sublane packing: f32 -> 8, bf16 -> 16, int8/fp8 -> 32
    sub = {4: 8, 2: 16, 1: 32}.get(itemsize, 8)

    budget = _vmem_budget_bytes()
    headroom = 2 << 20

    def fits(tm_, tn_):
        # Conservative: budget 2 buffers for every operand (including the
        # invariant W block, since we don't rely on single-buffering support).
        need = itemsize * (2 * tm_ * H + 2 * H * tn_ + 2 * tn_ + 2 * tm_ * tn_)
        return need + headroom <= budget

    N128 = _round_up(N, 128)

    # --- strategy 1: W fully VMEM-resident, 1-D grid over M tiles only ---
    resident = False
    TM = _round_up(min(tm, _round_up(M, sub)), sub)
    TN = N128
    while True:
        if fits(TM, N128):
            resident = True
            break
        if TM <= 2 * sub:
            break
        TM = _round_up(max(sub, TM // 2), sub)

    if not resident:
        # --- strategy 2: stream W with N-outer / M-inner grid (W read once) ---
        TM = _round_up(min(tm, _round_up(M, sub)), sub)
        TN = _round_up(min(tn, N128), 128)
        while not fits(TM, TN):
            if TN > 128:
                TN = _round_up(max(128, TN // 2), 128)
            elif TM > sub:
                TM = _round_up(max(sub, TM // 2), sub)
            else:
                break

    M_pad = _round_up(M, TM)
    N_pad = _round_up(N, TN) if not resident else N128

    # --- pad ragged dims in the wrapper (only when actually needed) ---
    x2d = hidden_states.reshape(M, H)
    if M_pad != M:
        x2d = jnp.pad(x2d, ((0, M_pad - M), (0, 0)))
    w2d = weight
    b2d = bias.reshape(1, N)
    if N_pad != N:
        # Dead code for standard BERT sizes (intermediate_size % 128 == 0).
        # TODO(synk): for real deployments pad W/bias once at parameter load.
        w2d = jnp.pad(w2d, ((0, 0), (0, N_pad - N)))
        b2d = jnp.pad(b2d, ((0, 0), (0, N_pad - N)))

    m_tiles = M_pad // TM
    n_tiles = N_pad // TN

    if resident:
        grid = (m_tiles,)
        in_specs = [
            pl.BlockSpec((TM, H), lambda i: (i, 0)),        # x streams over M
            pl.BlockSpec((H, N_pad), lambda i: (0, 0)),     # W: invariant -> DMA'd once, VMEM-resident
            pl.BlockSpec((1, N_pad), lambda i: (0, 0)),     # bias: invariant
        ]
        out_specs = pl.BlockSpec((TM, N_pad), lambda i: (i, 0))
        dims = ("parallel",)
        bytes_accessed = (M_pad * H + H * N_pad + N_pad + M_pad * N_pad) * itemsize
    else:
        # N outer, M inner: W/bias block index is invariant over the inner loop,
        # so W is read from HBM exactly once; x is the streamed operand.
        grid = (n_tiles, m_tiles)
        in_specs = [
            pl.BlockSpec((TM, H), lambda j, i: (i, 0)),
            pl.BlockSpec((H, TN), lambda j, i: (0, j)),
            pl.BlockSpec((1, TN), lambda j, i: (0, j)),
        ]
        out_specs = pl.BlockSpec((TM, TN), lambda j, i: (i, j))
        dims = ("parallel", "parallel")
        bytes_accessed = (M_pad * H * n_tiles + H * N_pad + N_pad
                          + M_pad * N_pad) * itemsize

    tn_blk = N_pad if resident else TN
    need = itemsize * (2 * TM * H + 2 * H * tn_blk + 2 * tn_blk + 2 * TM * tn_blk)
    vmem_limit = int(min(budget, max(32 << 20, need + (4 << 20))))

    cost = pl.CostEstimate(
        flops=2 * M_pad * N_pad * H + 8 * M_pad * N_pad,
        transcendentals=M_pad * N_pad,
        bytes_accessed=bytes_accessed,
    )

    out2d = pl.pallas_call(
        _bert_intermediate_kernel,
        out_shape=jax.ShapeDtypeStruct((M_pad, N_pad), dtype),
        grid=grid,
        in_specs=in_specs,
        out_specs=out_specs,
        compiler_params=pltpu.CompilerParams(
            dimension_semantics=dims,
            vmem_limit_bytes=vmem_limit,
        ),
        cost_estimate=cost,
    )(x2d, w2d, b2d)

    # Slice only the dims that were actually padded.
    if N_pad != N:
        out2d = out2d[:, :N]
    if M_pad != M:
        out2d = out2d[:M]
    return out2d.reshape(B, S, N)


def _reference(hidden_states, weight, bias):
    y = jnp.einsum("bsh,hn->bsn", hidden_states, weight) + bias
    return y * 0.5 * (1.0 + lax.erf(y / jnp.sqrt(2.0)))


if __name__ == "__main__":
    key = jax.random.PRNGKey(0)
    k_x, k_w, k_b, k_x2, k_x3 = jax.random.split(key, 5)

    # Small config consistent with the module: hidden_size=32, intermediate_size=64.
    batch, seq, hidden_size, intermediate_size = 2, 8, 32, 64

    hidden_states = jax.random.normal(k_x, (batch, seq, hidden_size), dtype=jnp.float32)
    # Deterministic nn.Linear-style init (synthetic; no checkpoint load).
    bound = 1.0 / math.sqrt(hidden_size)
    weight = jax.random.uniform(
        k_w, (hidden_size, intermediate_size), dtype=jnp.float32,
        minval=-bound, maxval=bound)
    bias = jax.random.uniform(
        k_b, (intermediate_size,), dtype=jnp.float32, minval=-bound, maxval=bound)

    out = bert_intermediate(hidden_states, weight, bias)
    out = jax.block_until_ready(out)
    ref = _reference(hidden_states, weight, bias)
    assert out.shape == (batch, seq, intermediate_size)
    assert jnp.allclose(out, ref, atol=1e-5, rtol=1e-5)

    # Ragged-M case (B*S not a multiple of 8) exercises the row-padding path.
    hs2 = jax.random.normal(k_x2, (3, 5, hidden_size), dtype=jnp.float32)
    out2 = jax.block_until_ready(bert_intermediate(hs2, weight, bias))
    ref2 = _reference(hs2, weight, bias)
    assert out2.shape == (3, 5, intermediate_size)
    assert jnp.allclose(out2, ref2, atol=1e-5, rtol=1e-5)

    # Multi-tile case (M > TM) exercises the m_tiles > 1 resident-W grid.
    hs3 = jax.random.normal(k_x3, (16, 128, hidden_size), dtype=jnp.float32)
    out3 = jax.block_until_ready(bert_intermediate(hs3, weight, bias))
    ref3 = _reference(hs3, weight, bias)
    assert out3.shape == (16, 128, intermediate_size)
    assert jnp.allclose(out3, ref3, atol=1e-5, rtol=1e-5)

    print("KERNEL_OK")
</pallas_src>

<mosaic_0001>
module attributes {stable_mosaic.version = 11 : i64} {
  func.func @_bert_intermediate_kernel(%arg0: i32, %arg1: memref<16x32xf32, #tpu.memory_space<vmem>>, %arg2: memref<32x128xf32, #tpu.memory_space<vmem>>, %arg3: memref<1x128xf32, #tpu.memory_space<vmem>>, %arg4: memref<16x128xf32, #tpu.memory_space<vmem>>) attributes {dimension_semantics = [#tpu.dimension_semantics<parallel>], iteration_bounds = array<i64: 1>, scalar_prefetch = 0 : i64, scratch_operands = 0 : i64, tpu.core_type = #tpu.core_type<tc>, window_params = [{transform_indices = @transform_0, window_bounds = array<i64: 16, 32>}, {pipeline_mode = #tpu.pipeline_mode<synchronous>, transform_indices = @transform_1, window_bounds = array<i64: 32, 128>}, {pipeline_mode = #tpu.pipeline_mode<synchronous>, transform_indices = @transform_2, window_bounds = array<i64: 1, 128>}, {transform_indices = @transform_3, window_bounds = array<i64: 16, 128>}]} {
    %c0 = arith.constant 0 : index
    %c0_0 = arith.constant 0 : index
    %0 = vector.load %arg1[%c0, %c0_0] : memref<16x32xf32, #tpu.memory_space<vmem>>, vector<16x32xf32>
    %c0_1 = arith.constant 0 : index
    %c0_2 = arith.constant 0 : index
    %1 = vector.load %arg2[%c0_1, %c0_2] : memref<32x128xf32, #tpu.memory_space<vmem>>, vector<32x128xf32>
    %cst = arith.constant dense<0.000000e+00> : vector<16x128xf32>
    %2 = tpu.matmul %0, %1, %cst {dimension_numbers = #tpu.dot_dimension_numbers<[1], [0], [0], [1], [0, 0, 1, 1], [], []>} : vector<16x32xf32>, vector<32x128xf32>, vector<16x128xf32> -> vector<16x128xf32>
    %c0_3 = arith.constant 0 : index
    %c0_4 = arith.constant 0 : index
    %3 = vector.load %arg3[%c0_3, %c0_4] : memref<1x128xf32, #tpu.memory_space<vmem>>, vector<1x128xf32>
    %4 = vector.broadcast %3 : vector<1x128xf32> to vector<16x128xf32>
    %5 = arith.addf %2, %4 : vector<16x128xf32>
    %cst_5 = arith.constant 5.000000e-01 : f32
    %6 = vector.broadcast %cst_5 : f32 to vector<16x128xf32>
    %7 = arith.mulf %5, %6 : vector<16x128xf32>
    %cst_6 = arith.constant 0.707106769 : f32
    %8 = vector.broadcast %cst_6 : f32 to vector<16x128xf32>
    %9 = arith.mulf %5, %8 : vector<16x128xf32>
    %10 = math.erf %9 : vector<16x128xf32>
    %cst_7 = arith.constant 1.000000e+00 : f32
    %11 = vector.broadcast %cst_7 : f32 to vector<16x128xf32>
    %12 = arith.addf %11, %10 : vector<16x128xf32>
    %13 = arith.mulf %7, %12 : vector<16x128xf32>
    %c0_8 = arith.constant 0 : index
    %c0_9 = arith.constant 0 : index
    %14 = vector.load %arg4[%c0_8, %c0_9] : memref<16x128xf32, #tpu.memory_space<vmem>>, vector<16x128xf32>
    tpu.vector_store %arg4[%c0_8, %c0_9], %13 {strides = array<i32>} : memref<16x128xf32, #tpu.memory_space<vmem>>, vector<16x128xf32>,
    return
  }
  func.func @transform_0(%arg0: i32) -> (i32, i32) {
    %c0_i32 = arith.constant 0 : i32
    %c0_i32_0 = arith.constant 0 : i32
    return %arg0, %c0_i32 : i32, i32
  }
  func.func @transform_1(%arg0: i32) -> (i32, i32) {
    %c0_i32 = arith.constant 0 : i32
    %c0_i32_0 = arith.constant 0 : i32
    %c0_i32_1 = arith.constant 0 : i32
    return %c0_i32, %c0_i32_0 : i32, i32
  }
  func.func @transform_2(%arg0: i32) -> (i32, i32) {
    %c0_i32 = arith.constant 0 : i32
    %c0_i32_0 = arith.constant 0 : i32
    %c0_i32_1 = arith.constant 0 : i32
    return %c0_i32, %c0_i32_0 : i32, i32
  }
  func.func @transform_3(%arg0: i32) -> (i32, i32) {
    %c0_i32 = arith.constant 0 : i32
    %c0_i32_0 = arith.constant 0 : i32
    return %arg0, %c0_i32 : i32, i32
  }
}

</mosaic_0001>

<bundles_post_ra>
// kernel: tpu_custom_call.1
= control target key start
LH: loop header
LB: loop body
LE: loop exit
PB: predicated region body
PF: predicated region fallthrough
CT: control target
= control target key end

     0   :  { %8 = vsyncpa [#allocation3], 0  ;;  %s350_s0 = inlined_call_operand.hbm [shape: f32[16,32], index: 0, kind: input, shape index: {}]   ;;  %s351_s1 = inlined_call_operand.hbm [shape: f32[32,128], index: 1, kind: input, shape index: {}]   ;;  %s352_s2 = inlined_call_operand.vmem [shape: f32[1,128], index: 2, kind: input, shape index: {}]   ;;  %s353_s3 = inlined_call_operand.hbm [shape: f32[16,128], index: 3, kind: output, shape index: {}]  }
   0x1   :  { %9 = vsyncpa [#allocation6], 0 }
   0x2   :  { %10 = vsyncpa [#allocation4], 0  ;;  %s277_s12 = smov [#allocation2]   ;;  %s205_s16 = scalar_lea.hbm %s350_s0, 256 }
   0x3   :  { %s16_s13 = sshll.u32 %s277_s12, 4  ;;  %p206_p0 = scmp.ne.s32.totalorder %s350_s0, %s205_s16  ;;  %s17_s13 = int_to_ptr.vmem [resolvable:$true] %s16_s13 }
   0x4   :  { %p209_p1 = scmp.lt.u32.totalorder %s205_s16, %s350_s0 }
   0x6   :  { %p211_p2 = pnand %p209_p1, %p206_p0 }
   0x8   :  { %214 = shalt.err (!%p211_p2)
}
   0x9   :  { %s215_s21 = scalar_lea.vmem %s17_s13, 256  ;;  %p220_p4 = scmp.lt.s32.totalorder %s17_s13, %s17_s13 }
   0xa   :  { %p216_p3 = scmp.ne.s32.totalorder %s17_s13, %s215_s21  ;;  %p221_p5 = scmp.lt.s32.totalorder %s215_s21, %s215_s21 }
   0xc   :  { %p222_p6 = por %p221_p5, %p220_p4 }
   0xe   :  { %p223_p7 = pnand %p222_p6, %p216_p3 }
  0x10   :  { %226 = shalt.err (!%p223_p7)
}
  0x11   :  { %s278_s22 = smov 128   ;;  %s279_s23 = smov 8  }
  0x12   :  { %22 = dma.hbm_to_vmem [thread:$0]  %s350_s0, 256, %s17_s13, [#allocation3], %s278_s22, %s278_s22, %s279_s23  }
  0x13   :  { %s280_s26 = smov [#allocation5]   ;;  %s227_s30 = scalar_lea.hbm %s351_s1, 512 }
  0x14   :  { %s28_s27 = sshll.u32 %s280_s26, 4  ;;  %p228_p8 = scmp.ne.s32.totalorder %s351_s1, %s227_s30  ;;  %s29_s27 = int_to_ptr.vmem [resolvable:$true] %s28_s27 }
  0x15   :  { %p231_p9 = scmp.lt.u32.totalorder %s227_s30, %s351_s1 }
  0x17   :  { %p233_p10 = pnand %p231_p9, %p228_p8 }
  0x19   :  { %236 = shalt.err (!%p233_p10)
}
  0x1a   :  { %s237_s8 = scalar_lea.vmem %s29_s27, 512  ;;  %p242_p12 = scmp.lt.s32.totalorder %s29_s27, %s29_s27 }
  0x1b   :  { %p238_p11 = scmp.ne.s32.totalorder %s29_s27, %s237_s8  ;;  %p243_p13 = scmp.lt.s32.totalorder %s237_s8, %s237_s8 }
  0x1d   :  { %p244_p0 = por %p243_p13, %p242_p12 }
  0x1f   :  { %p245_p1 = pnand %p244_p0, %p238_p11 }
  0x21   :  { %248 = shalt.err (!%p245_p1)
}
  0x22   :  { %34 = dma.hbm_to_vmem [thread:$0]  %s351_s1, 512, %s29_s27, [#allocation6], %s278_s22, %s278_s22, %s279_s23  }
  0x23   :  { %271 = dma.done.wait [#allocation3], 256  }
  0x24   :  { %272 = vsyncadd [#allocation3], 4294967040 }
  0x25   :  { %273 = dma.done.wait [#allocation6], 512  }
  0x26   :  { %274 = vsyncadd [#allocation6], 4294966784  ;;  %vm56_vm0 = vcmask 261120   ;;  %v45_v0 = vld [vmem:[#allocation5] sm:$0xff]  ;;  %v46_v1 = vld [vmem:[#allocation5 + $0x8] sm:$0xff]  ;;  %s281_s11 = smov [#allocation7]  }
  0x27   :  { %v47_v2 = vld [vmem:[#allocation5 + $0x10] sm:$0xff]  ;;  %v188_v3 = vpack.c.bf16 %v46_v1, %v45_v0  ;;  %v48_v4 = vld [vmem:[#allocation5 + $0x18] sm:$0xff]  ;;  %s155_s12 = sshll.u32 %s281_s11, 4  ;;  %s156_s12 = int_to_ptr.vmem [resolvable:$true] %s155_s12 }
  0x28   :  { %v43_v5 = vld [vmem:[#allocation2] sm:$0xff]  ;;  %v192_v6 = vpack.c.bf16 %v48_v4, %v47_v2  ;;  %v44_v7 = vld [vmem:[#allocation2 + $0x8] sm:$0xff]  ;;  %p254_p3 = scmp.lt.s32.totalorder %s156_s12, %s156_s12 }
  0x29   :  { %185 = vmatprep.mubr.msk.f32.mxu0 %vm56_vm0, %v43_v5  ;;  %189 = vmatprep.subr.bf16.mxu0 %v188_v3  ;;  %v168_v8 = vld [vmem:[%s352_s2] ss:$0 sm:$0xff]  ;;  %s249_s2 = scalar_lea.vmem %s156_s12, 256 }
  0x2a   :  { %191 = vmatpush3.bf16.msra.mxu0 %v188_v3  ;;  %p250_p2 = scmp.ne.s32.totalorder %s156_s12, %s249_s2  ;;  %p255_p4 = scmp.lt.s32.totalorder %s249_s2, %s249_s2 }
  0x2b   :  { %193 = vmatprep.subr.bf16.mxu0 %v192_v6 }
  0x2c   :  { %p256_p5 = por %p255_p4, %p254_p3 }
  0x2e   :  { %195 = vmatpush3.bf16.msra.mxu0 %v192_v6  ;;  %p257_p6 = pnand %p256_p5, %p250_p2 }
  0x31   :  { %186 = vmatmul.mubr.msk.f32.vlgmr.msra.gmra.mrb[0].mxu0 %vm56_vm0, %v44_v7 }
 0x104   :  { %v187_v9 = vpop.f32.mrb[0].mxu0 }
 0x105   :  { %v135_v10 = vadd.f32 %v187_v9, %v168_v8  ;;  %v129_v11 = vpop.f32.mrb[1].mxu0 }
 0x106   :  { %v130_v12 = vadd.f32 %v168_v8, %v129_v11 }
 0x107   :  { %v141_v13 = vmul.f32 0.70710677, %v135_v10  ;;  %v139_v17 = vmul.f32 0.5, %v135_v10 }
 0x108   :  { %v140_v14 = vmul.f32 0.70710677, %v130_v12  ;;  %v138_v19 = vmul.f32 0.5, %v130_v12 }
 0x109   :  { %201 = verf.f32 %v141_v13 }
 0x10a   :  { %203 = verf.f32 %v140_v14 }
 0x113   :  { %v202_v15 = vpop.eup %201 }
 0x114   :  { %v204_v16 = vpop.eup %203  ;;  %v145_v18 = vadd.f32 1.0, %v202_v15 }
 0x115   :  { %v144_v20 = vadd.f32 1.0, %v204_v16 }
 0x116   :  { %v147_v21 = vmul.f32 %v145_v18, %v139_v17 }
 0x117   :  { %v146_v22 = vmul.f32 %v144_v20, %v138_v19 }
 0x118   :  { %149 = vst [vmem:[#allocation7 + $0x8] sm:$0xff] %v147_v21 }
 0x119   :  { %148 = vst [vmem:[#allocation7] sm:$0xff] %v146_v22 }
 0x11a   :  { %260 = shalt.err (!%p257_p6)
}
 0x11b   :  { %s261_s15 = scalar_lea.hbm %s353_s3, 256 }
 0x11c   :  { %p262_p7 = scmp.ne.s32.totalorder %s353_s3, %s261_s15  ;;  %p265_p8 = scmp.lt.u32.totalorder %s261_s15, %s353_s3 }
 0x11e   :  { %p267_p9 = pnand %p265_p8, %p262_p7 }
 0x120   :  { %270 = shalt.err (!%p267_p9)
}
 0x121   :  { %161 = dma.vmem_to_hbm [thread:$0]  %s156_s12, 256, %s353_s3, [#allocation4], %s278_s22, %s278_s22, %s279_s23  }
 0x122   :  { %275 = dma.done.wait [#allocation4], 256  }
 0x123   :  { %276 = vsyncadd [#allocation4], 4294967040 }
 0x124   :  { %165 = vsyncpa [#allocation3], 1 }
 0x125   :  { %166 = vsyncpa [#allocation6], 1 }
 0x126   :  { %167 = vsyncpa [#allocation4], 1 }

</bundles_post_ra>
